<compile_context>
chip_gen: v7x
topology: tpu7x:2x2x1
jax: 0.10.0
libtpu: 0.0.40
codegen_flags: <defaults>
</compile_context>

<pallas_src>
import functools

import jax
import jax.numpy as jnp
from jax import lax
from jax.experimental import pallas as pl
from jax.experimental.pallas import tpu as pltpu

_EPS = 1e-5  # nn.BatchNorm2d default eps


# ------------------------------ fused kernel -------------------------------- #

def _double_conv_kernel(x_ref, w1_ref, s1_ref, b1_ref, w3_ref, s2_ref, b2_ref,
                        mask_ref, o_ref, *, H, W):
    # x_ref   : (1, Cin, H*W)      input image, channels on sublanes, pixels on lanes
    # w1_ref  : (Cmid, Cin)        1x1 conv weight
    # s1/b1   : (Cmid, 1)          folded BN1 scale / bias
    # w3_ref  : (Cout, 9*Cmid)     3x3 conv weight, column order (kh*3+kw)*Cmid + c
    # s2/b2   : (Cout, 1)          folded BN2 scale / bias
    # mask_ref: (9, H*W)           per-tap boundary masks (1.0 inside, 0.0 outside)
    # o_ref   : (1, Cout, H*W)     output image, channels-major
    HW = H * W

    # ---- stage 1: 1x1 conv + BN + ReLU (one MXU matmul, lane-dense N = H*W) ----
    y1 = jnp.dot(w1_ref[...], x_ref[0], preferred_element_type=jnp.float32)
    y1 = jnp.maximum(y1 * s1_ref[...] + b1_ref[...], 0.0)            # (Cmid, HW)

    masks = mask_ref[...]                                             # (9, HW)

    # ---- stage 2: 3x3 conv (pad=1) as roll + mask + ONE K=9*Cmid matmul ----
    patches = []
    for k in range(9):
        kh, kw = divmod(k, 3)
        off = (kh - 1) * W + (kw - 1)                 # static flat pixel offset
        if off == 0:
            shifted = y1                              # center tap: no shift needed
        else:
            # shifted[:, p] == y1[:, p + off]  (wrap-around is killed by the mask)
            shifted = pltpu.roll(y1, shift=(-off) % HW, axis=1)
        patches.append(shifted * masks[k:k + 1, :])   # zero out-of-image taps
    stacked = jnp.concatenate(patches, axis=0)        # (9*Cmid, HW)

    y2 = jnp.dot(w3_ref[...], stacked, preferred_element_type=jnp.float32)
    y2 = jnp.maximum(y2 * s2_ref[...] + b2_ref[...], 0.0)             # (Cout, HW)

    # ---- single lane-dense store (HW is a multiple of 128) ----
    o_ref[0] = y2.astype(o_ref.dtype)


# ------------------------------ Pallas wrapper ------------------------------- #

def double_conv2d(x_nchw, params):
    (w1, b1, g1, be1, m1, v1, w3, b3, g2, be2, m2, v2) = params
    B, Cin, H, W = x_nchw.shape
    Cmid = w1.shape[0]
    Cout = w3.shape[0]
    HW = H * W

    # Fold conv bias + BN (eval mode) into per-channel scale / bias.
    s1 = g1 / jnp.sqrt(v1 + _EPS)
    fb1 = (b1 - m1) * s1 + be1
    s2 = g2 / jnp.sqrt(v2 + _EPS)
    fb2 = (b3 - m2) * s2 + be2

    w1_mat = w1[:, :, 0, 0]                                          # (Cmid, Cin)
    # (Cout, Cmid, 3, 3) -> (Cout, kh, kw, Cmid) -> (Cout, 9*Cmid); column index
    # (kh*3+kw)*Cmid + c matches the in-kernel patch stacking order.
    w3_mat = jnp.transpose(w3, (0, 2, 3, 1)).reshape(Cout, 9 * Cmid)

    # Per-tap boundary masks over the flat pixel axis, built once (outside the
    # kernel) and passed as a constant-index block.
    hs = jnp.arange(H)
    ws = jnp.arange(W)
    mrows = []
    for k in range(9):
        kh, kw = divmod(k, 3)
        dh, dw = kh - 1, kw - 1
        row_ok = (hs + dh >= 0) & (hs + dh < H)                      # (H,)
        col_ok = (ws + dw >= 0) & (ws + dw < W)                      # (W,)
        mrows.append((row_ok[:, None] & col_ok[None, :]).reshape(HW))
    mask = jnp.stack(mrows, 0).astype(jnp.float32)                   # (9, HW)

    x_flat = x_nchw.reshape(B, Cin, HW)        # free reshape, stays channels-major

    kernel = functools.partial(_double_conv_kernel, H=H, W=W)
    out_flat = pl.pallas_call(
        kernel,
        out_shape=jax.ShapeDtypeStruct((B, Cout, HW), jnp.float32),
        grid=(B,),
        in_specs=[
            pl.BlockSpec((1, Cin, HW), lambda b: (b, 0, 0)),
            pl.BlockSpec((Cmid, Cin), lambda b: (0, 0)),
            pl.BlockSpec((Cmid, 1), lambda b: (0, 0)),
            pl.BlockSpec((Cmid, 1), lambda b: (0, 0)),
            pl.BlockSpec((Cout, 9 * Cmid), lambda b: (0, 0)),
            pl.BlockSpec((Cout, 1), lambda b: (0, 0)),
            pl.BlockSpec((Cout, 1), lambda b: (0, 0)),
            pl.BlockSpec((9, HW), lambda b: (0, 0)),
        ],
        out_specs=pl.BlockSpec((1, Cout, HW), lambda b: (b, 0, 0)),
        compiler_params=pltpu.CompilerParams(
            dimension_semantics=("parallel",)),
    )(x_flat, w1_mat, s1.reshape(Cmid, 1), fb1.reshape(Cmid, 1),
      w3_mat, s2.reshape(Cout, 1), fb2.reshape(Cout, 1), mask)

    return out_flat.reshape(B, Cout, H, W)     # free reshape back to NCHW


# -------------------------------- reference ---------------------------------- #

def reference(x, params):
    (w1, b1, g1, be1, m1, v1, w3, b3, g2, be2, m2, v2) = params
    dn = ("NCHW", "OIHW", "NCHW")

    def bn(y, g, be, m, v):
        return (y - m[None, :, None, None]) / jnp.sqrt(v + _EPS)[None, :, None, None] \
            * g[None, :, None, None] + be[None, :, None, None]

    y = lax.conv_general_dilated(x, w1, (1, 1), "VALID", dimension_numbers=dn)
    y = jnp.maximum(bn(y + b1[None, :, None, None], g1, be1, m1, v1), 0.0)
    y = lax.conv_general_dilated(y, w3, (1, 1), "SAME", dimension_numbers=dn)
    y = jnp.maximum(bn(y + b3[None, :, None, None], g2, be2, m2, v2), 0.0)
    return y


# ----------------------------------- main ------------------------------------ #

if __name__ == "__main__":
    in_c, mid_c, out_c = 2, 2, 4            # DoubleConv2d(in_channels=2, mid_channels=2, out_channels=4)
    B, H, W = 2, 16, 16
    C1 = in_c + mid_c                       # first conv consumes in_channels + mid_channels

    key = jax.random.PRNGKey(0)
    ks = jax.random.split(key, 10)
    x = jax.random.normal(ks[0], (B, C1, H, W), jnp.float32)

    # Conv weights/biases (deterministic synthetic init; PyTorch shapes)
    w1 = jax.random.normal(ks[1], (mid_c, C1, 1, 1), jnp.float32) * 0.2
    b1 = jax.random.normal(ks[2], (mid_c,), jnp.float32) * 0.1
    w3 = jax.random.normal(ks[3], (out_c, mid_c, 3, 3), jnp.float32) * 0.2
    b3 = jax.random.normal(ks[4], (out_c,), jnp.float32) * 0.1

    # BatchNorm parameters (eval mode): gamma, beta, running_mean, running_var
    g1 = 1.0 + 0.1 * jax.random.normal(ks[5], (mid_c,), jnp.float32)
    be1 = 0.1 * jax.random.normal(ks[6], (mid_c,), jnp.float32)
    m1 = 0.05 * jax.random.normal(ks[7], (mid_c,), jnp.float32)
    v1 = 0.5 + jax.random.uniform(ks[8], (mid_c,), jnp.float32)
    g2 = jnp.ones((out_c,), jnp.float32)
    be2 = jnp.zeros((out_c,), jnp.float32)
    m2 = 0.05 * jax.random.normal(ks[9], (out_c,), jnp.float32)
    v2 = 0.5 + jax.random.uniform(ks[0], (out_c,), jnp.float32)

    params = (w1, b1, g1, be1, m1, v1, w3, b3, g2, be2, m2, v2)

    out = double_conv2d(x, params)
    out = jax.block_until_ready(out)
    assert out.shape == (B, out_c, H, W), out.shape

    ref = jax.block_until_ready(reference(x, params))
    assert jnp.allclose(out, ref, atol=1e-4, rtol=1e-4), \
        float(jnp.max(jnp.abs(out - ref)))

    print("KERNEL_OK")
</pallas_src>

<mosaic_0001>
module attributes {stable_mosaic.version = 11 : i64} {
  func.func @_double_conv_kernel(%arg0: i32, %arg1: memref<1x4x256xf32, #tpu.memory_space<vmem>>, %arg2: memref<2x4xf32, #tpu.memory_space<vmem>>, %arg3: memref<2x1xf32, #tpu.memory_space<vmem>>, %arg4: memref<2x1xf32, #tpu.memory_space<vmem>>, %arg5: memref<4x18xf32, #tpu.memory_space<vmem>>, %arg6: memref<4x1xf32, #tpu.memory_space<vmem>>, %arg7: memref<4x1xf32, #tpu.memory_space<vmem>>, %arg8: memref<9x256xf32, #tpu.memory_space<vmem>>, %arg9: memref<1x4x256xf32, #tpu.memory_space<vmem>>) attributes {dimension_semantics = [#tpu.dimension_semantics<parallel>], iteration_bounds = array<i64: 2>, scalar_prefetch = 0 : i64, scratch_operands = 0 : i64, tpu.core_type = #tpu.core_type<tc>, window_params = [{transform_indices = @transform_0, window_bounds = array<i64: 1, 4, 256>}, {pipeline_mode = #tpu.pipeline_mode<synchronous>, transform_indices = @transform_1, window_bounds = array<i64: 2, 4>}, {pipeline_mode = #tpu.pipeline_mode<synchronous>, transform_indices = @transform_2, window_bounds = array<i64: 2, 1>}, {pipeline_mode = #tpu.pipeline_mode<synchronous>, transform_indices = @transform_3, window_bounds = array<i64: 2, 1>}, {pipeline_mode = #tpu.pipeline_mode<synchronous>, transform_indices = @transform_4, window_bounds = array<i64: 4, 18>}, {pipeline_mode = #tpu.pipeline_mode<synchronous>, transform_indices = @transform_5, window_bounds = array<i64: 4, 1>}, {pipeline_mode = #tpu.pipeline_mode<synchronous>, transform_indices = @transform_6, window_bounds = array<i64: 4, 1>}, {pipeline_mode = #tpu.pipeline_mode<synchronous>, transform_indices = @transform_7, window_bounds = array<i64: 9, 256>}, {transform_indices = @transform_8, window_bounds = array<i64: 1, 4, 256>}]} {
    %c0 = arith.constant 0 : index
    %c0_0 = arith.constant 0 : index
    %0 = vector.load %arg2[%c0, %c0_0] : memref<2x4xf32, #tpu.memory_space<vmem>>, vector<2x4xf32>
    %c0_1 = arith.constant 0 : index
    %c0_2 = arith.constant 0 : index
    %c0_3 = arith.constant 0 : index
    %1 = vector.load %arg1[%c0_1, %c0_2, %c0_3] : memref<1x4x256xf32, #tpu.memory_space<vmem>>, vector<1x4x256xf32>
    %2 = vector.shape_cast %1 : vector<1x4x256xf32> to vector<4x256xf32>
    %cst = arith.constant dense<0.000000e+00> : vector<2x256xf32>
    %3 = tpu.matmul %0, %2, %cst {dimension_numbers = #tpu.dot_dimension_numbers<[1], [0], [0], [1], [0, 0, 1, 1], [], []>} : vector<2x4xf32>, vector<4x256xf32>, vector<2x256xf32> -> vector<2x256xf32>
    %c0_4 = arith.constant 0 : index
    %c0_5 = arith.constant 0 : index
    %4 = vector.load %arg3[%c0_4, %c0_5] : memref<2x1xf32, #tpu.memory_space<vmem>>, vector<2x1xf32>
    %5 = vector.broadcast %4 : vector<2x1xf32> to vector<2x256xf32>
    %6 = arith.mulf %3, %5 : vector<2x256xf32>
    %c0_6 = arith.constant 0 : index
    %c0_7 = arith.constant 0 : index
    %7 = vector.load %arg4[%c0_6, %c0_7] : memref<2x1xf32, #tpu.memory_space<vmem>>, vector<2x1xf32>
    %8 = vector.broadcast %7 : vector<2x1xf32> to vector<2x256xf32>
    %9 = arith.addf %6, %8 : vector<2x256xf32>
    %cst_8 = arith.constant 0.000000e+00 : f32
    %10 = vector.broadcast %cst_8 : f32 to vector<2x256xf32>
    %11 = arith.maximumf %9, %10 : vector<2x256xf32>
    %c0_9 = arith.constant 0 : index
    %c0_10 = arith.constant 0 : index
    %12 = vector.load %arg8[%c0_9, %c0_10] : memref<9x256xf32, #tpu.memory_space<vmem>>, vector<9x256xf32>
    %c17_i32 = arith.constant 17 : i32
    %13 = tpu.dynamic_rotate %11 by %c17_i32 dim 1 : vector<2x256xf32>, i32 -> vector<2x256xf32>
    %14 = vector.extract_strided_slice %12 {offsets = [0, 0], sizes = [1, 256], strides = [1, 1]} : vector<9x256xf32> to vector<1x256xf32>
    %15 = vector.broadcast %14 : vector<1x256xf32> to vector<2x256xf32>
    %16 = arith.mulf %13, %15 : vector<2x256xf32>
    %c16_i32 = arith.constant 16 : i32
    %17 = tpu.dynamic_rotate %11 by %c16_i32 dim 1 : vector<2x256xf32>, i32 -> vector<2x256xf32>
    %18 = vector.extract_strided_slice %12 {offsets = [1, 0], sizes = [1, 256], strides = [1, 1]} : vector<9x256xf32> to vector<1x256xf32>
    %19 = vector.broadcast %18 : vector<1x256xf32> to vector<2x256xf32>
    %20 = arith.mulf %17, %19 : vector<2x256xf32>
    %c15_i32 = arith.constant 15 : i32
    %21 = tpu.dynamic_rotate %11 by %c15_i32 dim 1 : vector<2x256xf32>, i32 -> vector<2x256xf32>
    %22 = vector.extract_strided_slice %12 {offsets = [2, 0], sizes = [1, 256], strides = [1, 1]} : vector<9x256xf32> to vector<1x256xf32>
    %23 = vector.broadcast %22 : vector<1x256xf32> to vector<2x256xf32>
    %24 = arith.mulf %21, %23 : vector<2x256xf32>
    %c1_i32 = arith.constant 1 : i32
    %25 = tpu.dynamic_rotate %11 by %c1_i32 dim 1 : vector<2x256xf32>, i32 -> vector<2x256xf32>
    %26 = vector.extract_strided_slice %12 {offsets = [3, 0], sizes = [1, 256], strides = [1, 1]} : vector<9x256xf32> to vector<1x256xf32>
    %27 = vector.broadcast %26 : vector<1x256xf32> to vector<2x256xf32>
    %28 = arith.mulf %25, %27 : vector<2x256xf32>
    %29 = vector.extract_strided_slice %12 {offsets = [4, 0], sizes = [1, 256], strides = [1, 1]} : vector<9x256xf32> to vector<1x256xf32>
    %30 = vector.broadcast %29 : vector<1x256xf32> to vector<2x256xf32>
    %31 = arith.mulf %11, %30 : vector<2x256xf32>
    %c255_i32 = arith.constant 255 : i32
    %32 = tpu.dynamic_rotate %11 by %c255_i32 dim 1 : vector<2x256xf32>, i32 -> vector<2x256xf32>
    %33 = vector.extract_strided_slice %12 {offsets = [5, 0], sizes = [1, 256], strides = [1, 1]} : vector<9x256xf32> to vector<1x256xf32>
    %34 = vector.broadcast %33 : vector<1x256xf32> to vector<2x256xf32>
    %35 = arith.mulf %32, %34 : vector<2x256xf32>
    %c241_i32 = arith.constant 241 : i32
    %36 = tpu.dynamic_rotate %11 by %c241_i32 dim 1 : vector<2x256xf32>, i32 -> vector<2x256xf32>
    %37 = vector.extract_strided_slice %12 {offsets = [6, 0], sizes = [1, 256], strides = [1, 1]} : vector<9x256xf32> to vector<1x256xf32>
    %38 = vector.broadcast %37 : vector<1x256xf32> to vector<2x256xf32>
    %39 = arith.mulf %36, %38 : vector<2x256xf32>
    %c240_i32 = arith.constant 240 : i32
    %40 = tpu.dynamic_rotate %11 by %c240_i32 dim 1 : vector<2x256xf32>, i32 -> vector<2x256xf32>
    %41 = vector.extract_strided_slice %12 {offsets = [7, 0], sizes = [1, 256], strides = [1, 1]} : vector<9x256xf32> to vector<1x256xf32>
    %42 = vector.broadcast %41 : vector<1x256xf32> to vector<2x256xf32>
    %43 = arith.mulf %40, %42 : vector<2x256xf32>
    %c239_i32 = arith.constant 239 : i32
    %44 = tpu.dynamic_rotate %11 by %c239_i32 dim 1 : vector<2x256xf32>, i32 -> vector<2x256xf32>
    %45 = vector.extract_strided_slice %12 {offsets = [8, 0], sizes = [1, 256], strides = [1, 1]} : vector<9x256xf32> to vector<1x256xf32>
    %46 = vector.broadcast %45 : vector<1x256xf32> to vector<2x256xf32>
    %47 = arith.mulf %44, %46 : vector<2x256xf32>
    %48 = tpu.concatenate %16, %20, %24, %28, %31, %35, %39, %43, %47 in 0 : vector<2x256xf32>, vector<2x256xf32>, vector<2x256xf32>, vector<2x256xf32>, vector<2x256xf32>, vector<2x256xf32>, vector<2x256xf32>, vector<2x256xf32>, vector<2x256xf32> -> vector<18x256xf32>
    %c0_11 = arith.constant 0 : index
    %c0_12 = arith.constant 0 : index
    %49 = vector.load %arg5[%c0_11, %c0_12] : memref<4x18xf32, #tpu.memory_space<vmem>>, vector<4x18xf32>
    %cst_13 = arith.constant dense<0.000000e+00> : vector<4x256xf32>
    %50 = tpu.matmul %49, %48, %cst_13 {dimension_numbers = #tpu.dot_dimension_numbers<[1], [0], [0], [1], [0, 0, 1, 1], [], []>} : vector<4x18xf32>, vector<18x256xf32>, vector<4x256xf32> -> vector<4x256xf32>
    %c0_14 = arith.constant 0 : index
    %c0_15 = arith.constant 0 : index
    %51 = vector.load %arg6[%c0_14, %c0_15] : memref<4x1xf32, #tpu.memory_space<vmem>>, vector<4x1xf32>
    %52 = vector.broadcast %51 : vector<4x1xf32> to vector<4x256xf32>
    %53 = arith.mulf %50, %52 : vector<4x256xf32>
    %c0_16 = arith.constant 0 : index
    %c0_17 = arith.constant 0 : index
    %54 = vector.load %arg7[%c0_16, %c0_17] : memref<4x1xf32, #tpu.memory_space<vmem>>, vector<4x1xf32>
    %55 = vector.broadcast %54 : vector<4x1xf32> to vector<4x256xf32>
    %56 = arith.addf %53, %55 : vector<4x256xf32>
    %cst_18 = arith.constant 0.000000e+00 : f32
    %57 = vector.broadcast %cst_18 : f32 to vector<4x256xf32>
    %58 = arith.maximumf %56, %57 : vector<4x256xf32>
    %c0_19 = arith.constant 0 : index
    %c0_20 = arith.constant 0 : index
    %c0_21 = arith.constant 0 : index
    %59 = vector.load %arg9[%c0_19, %c0_20, %c0_21] : memref<1x4x256xf32, #tpu.memory_space<vmem>>, vector<1x4x256xf32>
    %60 = vector.shape_cast %59 : vector<1x4x256xf32> to vector<4x256xf32>
    %61 = vector.shape_cast %58 : vector<4x256xf32> to vector<1x4x256xf32>
    tpu.vector_store %arg9[%c0_19, %c0_20, %c0_21], %61 {strides = array<i32>} : memref<1x4x256xf32, #tpu.memory_space<vmem>>, vector<1x4x256xf32>,
    return
  }
  func.func @transform_0(%arg0: i32) -> (i32, i32, i32) {
    %c0_i32 = arith.constant 0 : i32
    %c0_i32_0 = arith.constant 0 : i32
    %c0_i32_1 = arith.constant 0 : i32
    return %arg0, %c0_i32, %c0_i32_0 : i32, i32, i32
  }
  func.func @transform_1(%arg0: i32) -> (i32, i32) {
    %c0_i32 = arith.constant 0 : i32
    %c0_i32_0 = arith.constant 0 : i32
    %c0_i32_1 = arith.constant 0 : i32
    return %c0_i32, %c0_i32_0 : i32, i32
  }
  func.func @transform_2(%arg0: i32) -> (i32, i32) {
    %c0_i32 = arith.constant 0 : i32
    %c0_i32_0 = arith.constant 0 : i32
    %c0_i32_1 = arith.constant 0 : i32
    return %c0_i32, %c0_i32_0 : i32, i32
  }
  func.func @transform_3(%arg0: i32) -> (i32, i32) {
    %c0_i32 = arith.constant 0 : i32
    %c0_i32_0 = arith.constant 0 : i32
    %c0_i32_1 = arith.constant 0 : i32
    return %c0_i32, %c0_i32_0 : i32, i32
  }
  func.func @transform_4(%arg0: i32) -> (i32, i32) {
    %c0_i32 = arith.constant 0 : i32
    %c0_i32_0 = arith.constant 0 : i32
    %c0_i32_1 = arith.constant 0 : i32
    return %c0_i32, %c0_i32_0 : i32, i32
  }
  func.func @transform_5(%arg0: i32) -> (i32, i32) {
    %c0_i32 = arith.constant 0 : i32
    %c0_i32_0 = arith.constant 0 : i32
    %c0_i32_1 = arith.constant 0 : i32
    return %c0_i32, %c0_i32_0 : i32, i32
  }
  func.func @transform_6(%arg0: i32) -> (i32, i32) {
    %c0_i32 = arith.constant 0 : i32
    %c0_i32_0 = arith.constant 0 : i32
    %c0_i32_1 = arith.constant 0 : i32
    return %c0_i32, %c0_i32_0 : i32, i32
  }
  func.func @transform_7(%arg0: i32) -> (i32, i32) {
    %c0_i32 = arith.constant 0 : i32
    %c0_i32_0 = arith.constant 0 : i32
    %c0_i32_1 = arith.constant 0 : i32
    return %c0_i32, %c0_i32_0 : i32, i32
  }
  func.func @transform_8(%arg0: i32) -> (i32, i32, i32) {
    %c0_i32 = arith.constant 0 : i32
    %c0_i32_0 = arith.constant 0 : i32
    %c0_i32_1 = arith.constant 0 : i32
    return %arg0, %c0_i32, %c0_i32_0 : i32, i32, i32
  }
}

</mosaic_0001>

<bundles_post_ra>
// kernel: tpu_custom_call.1
= control target key start
LH: loop header
LB: loop body
LE: loop exit
PB: predicated region body
PF: predicated region fallthrough
CT: control target
= control target key end

     0   :  { %13 = vsyncpa [#allocation3], 0  ;;  %s1338_s0 = inlined_call_operand.hbm [shape: f32[2,4,256], index: 0, kind: input, shape index: {}]   ;;  %s1339_s1 = inlined_call_operand.vmem [shape: f32[2,4], index: 1, kind: input, shape index: {}]   ;;  %s1340_s2 = inlined_call_operand.vmem [shape: f32[2,1], index: 2, kind: input, shape index: {}]   ;;  %s1341_s3 = inlined_call_operand.vmem [shape: f32[2,1], index: 3, kind: input, shape index: {}]   ;;  %s1342_s4 = inlined_call_operand.vmem [shape: f32[4,18], index: 4, kind: input, shape index: {}]   ;;  %s1343_s5 = inlined_call_operand.vmem [shape: f32[4,1], index: 5, kind: input, shape index: {}]   ;;  %s1344_s6 = inlined_call_operand.vmem [shape: f32[4,1], index: 6, kind: input, shape index: {}]   ;;  %s1345_s7 = inlined_call_operand.vmem [shape: f32[9,256], index: 7, kind: input, shape index: {}]   ;;  %s1346_s8 = inlined_call_operand.hbm [shape: f32[2,4,256], index: 8, kind: output, shape index: {}]  }
   0x1   :  { %15 = vsyncpa [#allocation3 + $0x1], 0 }
   0x2   :  { %16 = vsyncpa [#allocation4], 0 }
   0x3   :  { %18 = vsyncpa [#allocation4 + $0x1], 0  ;;  %s1058_s27 = smov 0   ;;  %s1060_s28 = smov 0  }
   0x4   :  { %s1062_s29 = smov 0   ;;  %s1064_s30 = smov 0  }
   0x5 LB: > { %s1079_s9 = sadd.s32 4294967295, %s999_s30   ;;  %s816_s10 = sadd.s32 4294967294, %s999_s30   ;;  %s999_s30 = sphi %s1064_s30, %s1361_s30   ;;  %s995_s29 = sphi %s1062_s29, %s1360_s29   ;;  %s991_s28 = sphi %s1060_s28, %s1359_s28   ;;  %s987_s27 = sphi %s1058_s27, %s1358_s27  }
   0x6   : > { %s1083_s11 = sadd.s32 1, %s999_s30   ;;  %s31_s12 = sadd.s32 1, %s995_s29 }
   0x7   : > { %s28_s13 = ssub.s32 %s999_s30, %s1083_s11  ;;  %p38_p0 = scmp.ne.s32.totalorder %s995_s29, %s991_s28 }
   0x8   : > { %p29_p1 = scmp.eq.s32.totalorder %s28_s13, 0  ;;  %p39_p2 = scmp.eq.s32.totalorder %s999_s30, 0 }
   0x9   : > { %p44_p3 = scmp.ne.s32.totalorder %s991_s28, %s987_s27  ;;  %p45_p4 = scmp.eq.s32.totalorder %s1079_s9, 0 }
   0xa   : > { %s1095_s14 = scalar_select %p29_p1, %s995_s29, %s31_s12  }
   0xb   : > { %p1097_p5 = por %p39_p2, %p38_p0  ;;  %p1101_p6 = por %p45_p4, %p44_p3 }
   0xc   : > { %p215_p7 = scmp.eq.s32.totalorder %s1079_s9, 1  ;;  %p221_p8 = scmp.eq.s32.totalorder %s816_s10, 1 }
   0xd   : > { %p856_p10 = scmp.lt.s32.totalorder %s999_s30, 2  ;;  %s262_s19 = sand.u32 1, %s995_s29  }
   0xe   : > { %p1108_p11 = por %p215_p7, %p38_p0  ;;  %p1112_p12 = por %p221_p8, %p44_p3 }
   0xf   : > { %s838_s20 = sshll.u32 %s999_s30, 7  ;;  %s819_s21 = sshll.u32 %s262_s19, 3 }
  0x10   : > { %s1350_s17 = scalar_select %p1108_p11, 1, 0 }
  0x11   : > { %s1351_s18 = scalar_select %p1112_p12, 1, 0 }
  0x12   : > { %s1121_s24 = scalar_lea.hbm %s1338_s0, %s838_s20  ;;  %s266_s25 = scalar_lea.vmem [#allocation2], %s819_s21 }
  0x13   : > { %s274_s26 = sshll.u32 %s266_s25, 4  ;;  %p1125_p13 = pnand %p856_p10, %p1097_p5  ;;  %s1129_s26 = int_to_ptr.vmem [resolvable:$true] %s274_s26 }
  0x14   : > { %s263_s12 = scalar_lea.sflag [#allocation3], %s262_s19  ;;  %s903_s13 = scalar_lea.hbm %s1121_s24, 128 }
  0x15   : > { %p904_p2 = scmp.ne.s32.totalorder %s1121_s24, %s903_s13  ;;  %p905_p3 = pneg %p1125_p13 }
  0x16   : > { %s908_s21 = scalar_lea.hbm %s1338_s0, 256  ;;  %p909_p5 = scmp.lt.u32.totalorder %s1121_s24, %s1338_s0 }
  0x17   : > { %p906_p4 = pnand %p905_p3, %p904_p2  ;;  %p910_p8 = scmp.lt.u32.totalorder %s908_s21, %s903_s13 }
  0x18   : > { %p912_p9 = scmp.lt.u32.totalorder %s903_s13, %s1121_s24 }
  0x19   : > { %p907_p7 = pneg %p906_p4  ;;  %p911_p10 = por %p910_p8, %p909_p5 }
  0x1b   : > { %p913_p0 = por %p912_p9, %p911_p10 }
  0x1d   : > { %p914_p1 = pnand %p913_p0, %p907_p7 }
  0x1f   : > { %917 = shalt.err (!%p914_p1)
}
  0x20   : > { %s918_s19 = scalar_lea.vmem %s1129_s26, 128  ;;  %s1001_s25 = smov [#allocation2]  }
  0x21   : > { %p919_p2 = scmp.ne.s32.totalorder %s1129_s26, %s918_s19  ;;  %s923_s15 = sshll.u32 %s1001_s25, 4  ;;  %s924_s15 = int_to_ptr.vmem [resolvable:$false] %s923_s15 }
  0x22   : > { %s925_s20 = scalar_lea.vmem %s924_s15, 256  ;;  %p926_p11 = scmp.lt.s32.totalorder %s1129_s26, %s924_s15 }
  0x23   : > { %p921_p4 = pnand %p919_p2, %p905_p3  ;;  %p927_p5 = scmp.lt.s32.totalorder %s925_s20, %s918_s19 }
  0x25   : > { %p922_p12 = pneg %p921_p4  ;;  %p928_p8 = por %p927_p5, %p926_p11 }
  0x27   : > { %p929_p9 = pnand %p928_p8, %p922_p12 }
  0x29   : > { %932 = shalt.err (!%p929_p9)
}
  0x2a   : > { %851 = dma.hbm_to_vmem [thread:$0]  (!%p1125_p13), %s1121_s24, 128, %s1129_s26, %s263_s12  }
  0x2b   : > { %p1353_p0 = scmp.lt.s32.totalorder %s999_s30, 3  ;;  %p1354_p1 = scmp.ge.s32.totalorder %s999_s30, 1 }
  0x2d   : > { %p280_p3 = pnand %p1354_p1, %p1353_p0 }
  0x2e   : > { %s1163_s13 = sand.u32 (!%p280_p3), 1, %s991_s28  }
  0x2f   : > { %283 = sbr.rel (%p280_p3) target bundleno = 670 (0x29e), region = 52  ;;  %s823_s21 = sshll.u32 (!%p280_p3), %s1163_s13, 3 }
  0x30   : > { %s286_s22 = scalar_lea.sflag (!%p280_p3), [#allocation3], %s1163_s13  ;;  %s289_s10 = scalar_lea.vmem (!%p280_p3), [#allocation2], %s823_s21 }
  0x36   : > { %978 = dma.done.wait (%p1101_p6), %s286_s22, 128  }
  0x37   : > { %980 = vsyncadd (%p1101_p6), %s286_s22, 4294967168  ;;  %v1002_v0 = vmov 0.0   ;;  %v1003_v1 = vmov 0   ;;  %v323_v2 = vld [vmem:[%s289_s10] sm:$0xff]  ;;  %vm330_vm0 = vcmask 1043456   ;;  %vm326_vm1 = vcmask 31744  }
  0x38   : > { %399 = vmatprep.mubr.f32.mxu0 %v1002_v0  ;;  %900 = vset.pattern.permute.xlu0 %v1003_v1  ;;  %v406_v3 = vld [vmem:[%s1340_s2] sm:$0x3]  ;;  %v325_v4 = vcombine.high %v323_v2, %v323_v2  ;;  %s1004_s25 = smov 127   ;;  %s1005_s15 = smov 16   ;;  %v432_v21 = vlaneseq  ;;  %v425_v29 = vld [vmem:[%s1345_s7 + $0x8] sm:$0xff]  ;;  %vm612_vm8 = vcmask 1041408  }
  0x39   : > { %701 = vmatprep.mubr.f32.mxu1 %v1002_v0  ;;  %901 = vset.pattern.permute.xlu1 %v1003_v1  ;;  %v322_v5 = vld [vmem:[%s1339_s1] sm:$0x3]  ;;  %s1006_s20 = smov 15   ;;  %s1007_s22 = smov 113   ;;  %vm617_vm10 = vcmask 1045504   ;;  %vm627_vm12 = vcmask 146432  }
  0x3a   : > { %409 = vperm.xlu0 %900, %v406_v3   ;;  %v414_v6 = vld [vmem:[%s1341_s3] sm:$0x3]  ;;  %825 = vmatprep.subr.msk.mxu0 %vm330_vm0, %v325_v4  ;;  %s1008_s10 = smov 17   ;;  %s1009_s24 = smov 1   ;;  %v1200_v24 = vshrl.u32 %v432_v21, 7  ;;  %v1209_v30 = vand.u32 127, %v432_v21 }
  0x3b   : > { %826 = vmatpush1.msk.msra.mxu0 %vm330_vm0, %v323_v2  ;;  %s1010_s26 = smov 112   ;;  %s1011_s12 = smov 111   ;;  %v708_v17 = vld [vmem:[%s1343_s5] sm:$0xf] }
  0x3c   : > { %827 = vmatmul.mubr.msk.f32.vlgmr.msra.gmra.mrb[0].mxu0 %vm326_vm1, %v322_v5  ;;  %v716_v18 = vld [vmem:[%s1344_s6] sm:$0xf]  ;;  %v500_v27 = vsub.s32 4, %v1200_v24  ;;  %v456_v31 = vsub.s32 1, %v1200_v24  ;;  %v517_v32 = vsub.s32 5, %v1200_v24  ;;  %v473_v33 = vsub.s32 2, %v1200_v24 }
  0x3d   : > { %v424_v28 = vld [vmem:[%s1345_s7] sm:$0xff]  ;;  %vm451_vm2 = vcmp.lt.s32.totalorder %v1209_v30, 16  ;;  %v534_v38 = vsub.s32 6, %v1200_v24  ;;  %vm512_vm3 = vcmp.lt.s32.totalorder %v1209_v30, 127  ;;  %v439_v42 = vsub.s32 0, %v1200_v24  ;;  %p1355_p11 = scmp.ne.s32.totalorder %s1350_s17, 0 }
  0x3e   : > { %417 = vperm.xlu0 %900, %v414_v6   ;;  %v505_v35 = vrot.slane %v425_v29, %v500_v27  ;;  %v501_v36 = vrot.slane %v424_v28, %v500_v27  ;;  %v457_v37 = vrot.slane %v424_v28, %v456_v31  ;;  %v461_v39 = vrot.slane %v425_v29, %v456_v31 }
  0x3f   : > { %v518_v40 = vrot.slane %v424_v28, %v517_v32  ;;  %v522_v43 = vrot.slane %v425_v29, %v517_v32  ;;  %vm468_vm4 = vcmp.lt.s32.totalorder %v1209_v30, 15  ;;  %v474_v44 = vrot.slane %v424_v28, %v473_v33 }
  0x40   : > { %v490_v46 = vsub.s32 3, %v1200_v24  ;;  %v478_v47 = vrot.slane %v425_v29, %v473_v33  ;;  %vm529_vm5 = vcmp.lt.s32.totalorder %v1209_v30, 113  ;;  %v535_v50 = vrot.slane %v424_v28, %v534_v38 }
  0x41   : > { %v539_v51 = vrot.slane %v425_v29, %v534_v38  ;;  %vm434_vm6 = vcmp.lt.s32.totalorder %v1209_v30, 17  ;;  %v551_v52 = vsub.s32 7, %v1200_v24  ;;  %v440_v54 = vrot.slane %v424_v28, %v439_v42 }
  0x42   : > { %v444_v55 = vrot.slane %v425_v29, %v439_v42  ;;  %vm485_vm7 = vcmp.lt.s32.totalorder %v1209_v30, 1  ;;  %v491_v60 = vrot.slane %v424_v28, %v490_v46  ;;  %v495_v1 = vrot.slane %v425_v29, %v490_v46 }
  0x43   : > { %vm546_vm9 = vcmp.lt.s32.totalorder %v1209_v30, 112  ;;  %v552_v4 = vrot.slane %v424_v28, %v551_v52  ;;  %vm563_vm11 = vcmp.lt.s32.totalorder %v1209_v30, 111 }
  0xb9   : > { %v410_v7 = vpop.permute.xlu0 %409 }
  0xbd   : > { %v418_v11 = vpop.permute.xlu0 %417 }
 0x10f   : > { %v401_v8 = vpop.f32.mrb[0].mxu0 }
 0x110   : > { %v412_v9 = vmul.f32 %v410_v7, %v401_v8  ;;  %v403_v10 = vpop.f32.mrb[1].mxu0 }
 0x111   : > { %v413_v12 = vmul.f32 %v410_v7, %v403_v10 }
 0x112   : > { %v420_v13 = vadd.f32 %v418_v11, %v412_v9 }
 0x113   : > { %v421_v15 = vadd.f32 %v418_v11, %v413_v12 }
 0x114   : > { %v1184_v14 = vmax.f32 %v420_v13, 0.0 }
 0x115   : > { %v423_v16 = vmax.f32 %v421_v15, 0.0 }
 0x116   : > { %508 = vrot.lane.b32.xlu0 %v1184_v14, %s1004_s25  ;;  %447 = vrot.lane.b32.xlu1 %v1184_v14, %s1005_s15  ;;  %v1224_v49 = vmul.f32 %v501_v36, %v1184_v14 }
 0x117   : > { %v1221_v48 = vmul.f32 %v505_v35, %v423_v16 }
 0x11a   : > { %464 = vrot.lane.b32.xlu0 %v1184_v14, %s1006_s20  ;;  %449 = vrot.lane.b32.xlu1 %v423_v16, %s1005_s15  ;;  %s321_s15 = scalar_lea.vmem [#allocation5], %s823_s21 }
 0x11e   : > { %525 = vrot.lane.b32.xlu0 %v1184_v14, %s1007_s22  ;;  %510 = vrot.lane.b32.xlu1 %v423_v16, %s1004_s25  ;;  %s839_s25 = sshll.u32 %s1079_s9, 7  ;;  %s1012_s9 = smov [#allocation5]  }
 0x11f   : > { %s937_s21 = sshll.u32 %s1012_s9, 4  ;;  %s938_s21 = int_to_ptr.vmem [resolvable:$false] %s937_s21 }
 0x120   : > { %s939_s23 = scalar_lea.vmem %s938_s21, 256 }
 0x122   : > { %428 = vrot.lane.b32.xlu0 %v1184_v14, %s1008_s10  ;;  %466 = vrot.lane.b32.xlu1 %v423_v16, %s1006_s20  ;;  %s746_s20 = sshll.u32 %s321_s15, 4  ;;  %s1296_s20 = int_to_ptr.vmem [resolvable:$true] %s746_s20 }
 0x123   : > { %p940_p7 = scmp.lt.s32.totalorder %s1296_s20, %s938_s21 }
 0x126   : > { %481 = vrot.lane.b32.xlu0 %v1184_v14, %s1009_s24  ;;  %527 = vrot.lane.b32.xlu1 %v423_v16, %s1007_s22 }
 0x12a   : > { %542 = vrot.lane.b32.xlu0 %v1184_v14, %s1010_s26  ;;  %430 = vrot.lane.b32.xlu1 %v423_v16, %s1008_s10 }
 0x12e   : > { %559 = vrot.lane.b32.xlu0 %v1184_v14, %s1011_s12  ;;  %483 = vrot.lane.b32.xlu1 %v423_v16, %s1009_s24  ;;  %s1294_s24 = scalar_lea.hbm %s1346_s8, %s839_s25 }
 0x132   : > { %711 = vperm.xlu0 %900, %v708_v17   ;;  %544 = vrot.lane.b32.xlu1 %v423_v16, %s1010_s26  ;;  %v556_v17 = vrot.slane %v425_v29, %v551_v52  ;;  %s732_s26 = scalar_lea.sflag [#allocation4], %s1163_s13 }
 0x136   : > { %561 = vrot.lane.b32.xlu1 %v423_v16, %s1011_s12  ;;  %s933_s12 = scalar_lea.vmem %s1296_s20, 128 }
 0x137   : > { %p934_p6 = scmp.ne.s32.totalorder %s1296_s20, %s933_s12  ;;  %p941_p10 = scmp.lt.s32.totalorder %s939_s23, %s933_s12 }
 0x139   : > { %p935_p12 = pnand %p934_p6, %p1355_p11  ;;  %p942_p2 = por %p941_p10, %p940_p7 }
 0x13a   : > { %719 = vperm.xlu1 %901, %v716_v18  }
 0x13b   : > { %p936_p13 = pneg %p935_p12 }
 0x13d   : > { %p943_p4 = pnand %p942_p2, %p936_p13 }
 0x188   : > { %v509_v19 = vpop.permute.xlu0 %508  ;;  %v448_v20 = vpop.permute.xlu1 %447 }
 0x18c   : > { %v465_v22 = vpop.permute.xlu0 %464  ;;  %v450_v23 = vpop.permute.xlu1 %449 }
 0x18d   : > { %v453_v53 = vsel %vm451_vm2, %v450_v23, %v448_v20  ;;  %v452_v56 = vsel %vm451_vm2, %v448_v20, %v450_v23 }
 0x18e   : > { %v462_v2 = vmul.f32 %v457_v37, %v453_v53  ;;  %v463_v5 = vmul.f32 %v461_v39, %v452_v56 }
 0x190   : > { %v511_v25 = vpop.permute.xlu1 %510  ;;  %v526_v26 = vpop.permute.xlu0 %525  ;;  %v578_v21 = vrot.slane %v462_v2, 6  ;;  %v579_v23 = vrot.slane %v463_v5, 6 }
 0x191   : > { %v513_v57 = vsel %vm512_vm3, %v509_v19, %v511_v25  ;;  %v514_v58 = vsel %vm512_vm3, %v511_v25, %v509_v19 }
 0x192   : > { %v523_v6 = vmul.f32 %v518_v40, %v513_v57  ;;  %v524_v7 = vmul.f32 %v522_v43, %v514_v58 }
 0x194   : > { %v467_v34 = vpop.permute.xlu1 %466  ;;  %v429_v41 = vpop.permute.xlu0 %428  ;;  %v597_v24 = vrot.slane %v524_v7, 6 }
 0x195   : > { %v469_v61 = vsel %vm468_vm4, %v465_v22, %v467_v34  ;;  %v470_v9 = vsel %vm468_vm4, %v467_v34, %v465_v22 }
 0x196   : > { %v480_v10 = vmul.f32 %v478_v47, %v469_v61  ;;  %v479_v22 = vmul.f32 %v474_v44, %v470_v9 }
 0x198   : > { %v528_v45 = vpop.permute.xlu1 %527  ;;  %v482_v62 = vpop.permute.xlu0 %481  ;;  %v585_v27 = vrot.slane %v480_v10, 4  ;;  %v584_v40 = vrot.slane %v479_v22, 4 }
 0x199   : > { %v530_v63 = vsel %vm529_vm5, %v526_v26, %v528_v45  ;;  %v531_v0 = vsel %vm529_vm5, %v528_v45, %v526_v26  ;;  %v596_v26 = vrot.slane %v523_v6, 6 }
 0x19a   : > { %v540_v11 = vmul.f32 %v535_v50, %v530_v63  ;;  %v541_v12 = vmul.f32 %v539_v51, %v531_v0  ;;  %v626_v63 = vld [vmem:[%s1342_s4] sm:$0xf] }
 0x19b   : > { %v620_v46 = vsel %vm612_vm8, %v1224_v49, %v596_v26 }
 0x19c   : > { %v431_v59 = vpop.permute.xlu1 %430  ;;  %v543_v25 = vpop.permute.xlu0 %542  ;;  %v602_v28 = vrot.slane %v540_v11, 4  ;;  %v603_v31 = vrot.slane %v541_v12, 4 }
 0x19d   : > { %v435_v3 = vsel %vm434_vm6, %v429_v41, %v431_v59  ;;  %v436_v8 = vsel %vm434_vm6, %v431_v59, %v429_v41  ;;  %v621_v41 = vsel %vm612_vm8, %v1221_v48, %v597_v24  ;;  %v829_v48 = vld [vmem:[%s1345_s7 + $0x18] ss:$0 sm:$0xff]  ;;  %v828_v59 = vld [vmem:[%s1345_s7 + $0x10] ss:$0 sm:$0xff] }
 0x19e   : > { %v446_v14 = vmul.f32 %v444_v55, %v435_v3  ;;  %v445_v18 = vmul.f32 %v440_v54, %v436_v8  ;;  %v623_v51 = vsel %vm330_vm0, %v621_v41, %v603_v31  ;;  %v622_v53 = vsel %vm330_vm0, %v620_v46, %v602_v28 }
 0x1a0   : > { %v484_v13 = vpop.permute.xlu1 %483  ;;  %v614_v35 = vsel %vm612_vm8, %v446_v14, %v579_v23  ;;  %v613_v39 = vsel %vm612_vm8, %v445_v18, %v578_v21  ;;  %v560_v47 = vpop.permute.xlu0 %559 }
 0x1a1   : > { %v486_v15 = vsel %vm485_vm7, %v482_v62, %v484_v13  ;;  %v487_v16 = vsel %vm485_vm7, %v484_v13, %v482_v62  ;;  %v616_v45 = vsel %vm330_vm0, %v614_v35, %v585_v27  ;;  %v615_v52 = vsel %vm330_vm0, %v613_v39, %v584_v40 }
 0x1a2   : > { %v496_v19 = vmul.f32 %v491_v60, %v487_v16  ;;  %v497_v20 = vmul.f32 %v495_v1, %v486_v15 }
 0x1a4   : > { %v545_v32 = vpop.permute.xlu1 %544  ;;  %v591_v33 = vrot.slane %v497_v20, 2  ;;  %v590_v36 = vrot.slane %v496_v19, 2 }
 0x1a5   : > { %v547_v34 = vsel %vm546_vm9, %v543_v25, %v545_v32  ;;  %v548_v29 = vsel %vm546_vm9, %v545_v32, %v543_v25 }
 0x1a6   : > { %v557_v37 = vmul.f32 %v552_v4, %v547_v34  ;;  %v558_v38 = vmul.f32 %v556_v17, %v548_v29  ;;  %v619_v50 = vsel %vm617_vm10, %v616_v45, %v591_v33  ;;  %v618_v49 = vsel %vm617_vm10, %v615_v52, %v590_v36 }
 0x1a8   : > { %v608_v42 = vrot.slane %v557_v37, 2  ;;  %v609_v43 = vrot.slane %v558_v38, 2  ;;  %v562_v44 = vpop.permute.xlu1 %561 }
 0x1a9   : > { %v565_v54 = vsel %vm563_vm11, %v562_v44, %v560_v47  ;;  %v564_v60 = vsel %vm563_vm11, %v560_v47, %v562_v44 }
 0x1aa   : > { %v625_v55 = vsel %vm617_vm10, %v623_v51, %v609_v43  ;;  %v624_v56 = vsel %vm617_vm10, %v622_v53, %v608_v42  ;;  %v575_v61 = vmul.f32 %v829_v48, %v565_v54  ;;  %v574_v62 = vmul.f32 %v828_v59, %v564_v60 }
 0x1ab   : > { %v840_v57 = vpack.c.bf16 %v625_v55, %v619_v50  ;;  %v842_v58 = vpack.c.bf16 %v624_v56, %v618_v49 }
 0x1ad   : > { %841 = vmatprep.subr.bf16.mxu1 %v840_v57 }
 0x1ae   : > { %843 = vmatpush1.bf16.msra.mxu1 %v842_v58 }
 0x1af   : > { %830 = vmatprep.subr.msk.mxu1 %vm612_vm8, %v575_v61 }
 0x1b1   : > { %v712_v0 = vpop.permute.xlu0 %711 }
 0x1b2   : > { %831 = vmatpush1.msk.msra.mxu1 %vm612_vm8, %v574_v62 }
 0x1b3   : > { %832 = vmatmul.mubr.msk.f32.vlgmr.msra.gmra.mrb[0].mxu1 %vm627_vm12, %v626_v63 }
 0x1b9   : > { %v720_v30 = vpop.permute.xlu1 %719 }
 0x286   : > { %v703_v1 = vpop.f32.mrb[0].mxu1 }
 0x287   : > { %v714_v2 = vmul.f32 %v712_v0, %v703_v1  ;;  %v705_v3 = vpop.f32.mrb[1].mxu1 }
 0x288   : > { %v715_v4 = vmul.f32 %v712_v0, %v705_v3 }
 0x289   : > { %v722_v5 = vadd.f32 %v720_v30, %v714_v2 }
 0x28a   : > { %v723_v6 = vadd.f32 %v720_v30, %v715_v4 }
 0x28b   : > { %v724_v7 = vmax.f32 %v722_v5, 0.0 }
 0x28c   : > { %v725_v8 = vmax.f32 %v723_v6, 0.0 }
 0x28e   : > { %v728_v9 = vcombine.low %v724_v7, %v725_v8 }
 0x290   : > { %730 = vst [vmem:[%s321_s15] sm:$0xff] %v728_v9 }
 0x291   : > { %946 = shalt.err (!%p943_p4)
}
 0x292   : > { %s947_s13 = scalar_lea.hbm %s1294_s24, 128  ;;  %s951_s25 = scalar_lea.hbm %s1346_s8, 256 }
 0x293   : > { %p948_p5 = scmp.ne.s32.totalorder %s1294_s24, %s947_s13  ;;  %p952_p0 = scmp.lt.u32.totalorder %s1294_s24, %s1346_s8 }
 0x294   : > { %p953_p1 = scmp.lt.u32.totalorder %s951_s25, %s947_s13  ;;  %p955_p6 = scmp.lt.u32.totalorder %s947_s13, %s1294_s24 }
 0x295   : > { %p949_p8 = pnand %p948_p5, %p1355_p11 }
 0x296   : > { %p954_p3 = por %p953_p1, %p952_p0 }
 0x297   : > { %p950_p9 = pneg %p949_p8 }
 0x298   : > { %p956_p12 = por %p955_p6, %p954_p3 }
 0x29a   : > { %p957_p13 = pnand %p956_p12, %p950_p9 }
 0x29c   : > { %960 = shalt.err (!%p957_p13)
}
 0x29d   : > { %846 = dma.vmem_to_hbm [thread:$0]  (%p1355_p11), %s1296_s20, 128, %s1294_s24, %s732_s26  }
 0x29e PF: > { %s758_s10 = sand.u32 1, %s987_s27   ;;  %p1356_p7 = scmp.ne.s32.totalorder %s1351_s18, 0 }
 0x29f   : > { %p1357_p10 = scmp.ge.s32.totalorder %s999_s30, 2  ;;  %s759_s12 = scalar_lea.sflag [#allocation4], %s758_s10 }
 0x2a1   : > { %p853_p2 = pnand %p1357_p10, %p1356_p7 }
 0x2a3   : > { %982 = dma.done.wait (!%p853_p2), %s759_s12, 128  }
 0x2a4   : > { %984 = vsyncadd (!%p853_p2), %s759_s12, 4294967168  ;;  %p21_p4 = scmp.ge.s32.totalorder %s1083_s11, 4   ;;  %s1358_s27 = smov %s991_s28 }
 0x2a5   : > { %s1359_s28 = smov %s995_s29  ;;  %s1360_s29 = smov %s1095_s14 }
 0x2a6   : > { %s1361_s30 = smov %s1083_s11  ;;  %23 = sbr.rel (!%p21_p4) target bundleno = 5 (0x5), region = 97 }
 0x2ad   :  { %764 = vsyncpa [#allocation3], 1 }
 0x2ae   :  { %766 = vsyncpa [#allocation3 + $0x1], 1 }
 0x2af   :  { %767 = vsyncpa [#allocation4], 1 }
 0x2b0   :  { %769 = vsyncpa [#allocation4 + $0x1], 1 }

</bundles_post_ra>
